<compile_context>
chip_gen: v6e
topology: v6e:2x2x1
jax: 0.10.0
libtpu: 0.0.40
codegen_flags: <defaults>
</compile_context>

<pallas_src>
import functools

import jax
import jax.numpy as jnp
from jax.experimental import pallas as pl
from jax.experimental.pallas import tpu as pltpu


def _largest_divisor(n, cap):
    for c in range(min(n, cap), 0, -1):
        if n % c == 0:
            return c
    return 1


def _t_blk(d, tb, n_tb):
    # forward direction walks time blocks 0..n_tb-1; backward walks n_tb-1..0
    return jnp.where(d == 0, tb, n_tb - 1 - tb)


# ----------------------------- LSTM kernel ---------------------------------
def _bilstm_kernel(x_ref, wih_ref, whh_ref, b_ref, out_ref,
                   xp_sc, h_sc, c_sc, *, hidden, tt, bp):
    """One (direction, time-block) grid point.

    x_ref   : (TT*Bp, nIn)   rows ordered (t, b) within the original time block
    wih_ref : (1, nIn, 4H)   W_ih^T for this direction
    whh_ref : (1, H, 4H)     W_hh^T for this direction
    b_ref   : (1, 1, 4H)     b_ih + b_hh
    out_ref : (1, TT*Bp, H)  hidden states, aligned to *original* time order
    xp_sc   : (TT*Bp, 4H)    VMEM slab for the hoisted input projection
    h_sc/c_sc : (Bp, H)      recurrent state carried across time blocks
    """
    tb = pl.program_id(1)

    @pl.when(tb == 0)
    def _():
        h_sc[...] = jnp.zeros_like(h_sc)
        c_sc[...] = jnp.zeros_like(c_sc)

    H = hidden

    # Hoisted time-parallel input projection: one MXU matmul for the whole
    # time block (bias b_ih + b_hh already fused in).
    xp_sc[...] = (jnp.dot(x_ref[...], wih_ref[0],
                          preferred_element_type=jnp.float32) + b_ref[0])

    w_hh = whh_ref[0]                       # (H, 4H)
    is_fwd = pl.program_id(0) == 0

    def step(i, carry):
        h, c = carry
        # local time index inside the block: fwd -> i, bwd -> tt-1-i
        tl = jnp.where(is_fwd, i, tt - 1 - i)
        row = pl.multiple_of(tl * bp, bp)
        g_x = xp_sc[pl.ds(row, bp), :]      # (Bp, 4H)
        gates = g_x + jnp.dot(h, w_hh, preferred_element_type=jnp.float32)

        # Full-width activations (2 EUP passes), then gate slices (i, f, g, o).
        sg = jax.nn.sigmoid(gates)
        th = jnp.tanh(gates)
        i_g = sg[:, 0 * H:1 * H]
        f_g = sg[:, 1 * H:2 * H]
        g_g = th[:, 2 * H:3 * H]
        o_g = sg[:, 3 * H:4 * H]

        c_new = f_g * c + i_g * g_g
        h_new = o_g * jnp.tanh(c_new)
        out_ref[0, pl.ds(row, bp), :] = h_new
        return h_new, c_new

    h_fin, c_fin = jax.lax.fori_loop(0, tt, step, (h_sc[...], c_sc[...]),
                                     unroll=True)
    h_sc[...] = h_fin
    c_sc[...] = c_fin


# --------------------------- Linear embedding kernel ------------------------
def _embed_kernel(f_ref, b_ref, wf_ref, wb_ref, bias_ref, o_ref):
    # [fwd, bwd] @ W_emb^T + b  ==  fwd @ Wf^T + bwd @ Wb^T + b
    o_ref[...] = (jnp.dot(f_ref[...], wf_ref[...],
                          preferred_element_type=jnp.float32)
                  + jnp.dot(b_ref[...], wb_ref[...],
                            preferred_element_type=jnp.float32)
                  + bias_ref[...])


# ------------------------------- Param prep ---------------------------------
def prepare_params(p, lane=128):
    """One-time layout prep: transposed weights, fused LSTM bias, lane-padded
    embedding weight/bias (so the Linear output last dim is 128-lane dense)."""
    H = p["w_hh"].shape[-1]
    n_out = p["w_emb"].shape[0]
    n_out_p = ((n_out + lane - 1) // lane) * lane
    wf = p["w_emb"][:, :H].T                       # (H, nOut) forward half
    wb = p["w_emb"][:, H:].T                       # (H, nOut) backward half
    pad = ((0, 0), (0, n_out_p - n_out))
    return {
        "wih_t": jnp.transpose(p["w_ih"], (0, 2, 1)),        # (2, nIn, 4H)
        "whh_t": jnp.transpose(p["w_hh"], (0, 2, 1)),        # (2, H, 4H)
        "bias": (p["b_ih"] + p["b_hh"])[:, None, :],          # (2, 1, 4H)
        "wf_t": jnp.pad(wf, pad),                             # (H, nOutP)
        "wb_t": jnp.pad(wb, pad),                             # (H, nOutP)
        "b_emb": jnp.pad(p["b_emb"], (0, n_out_p - n_out))[None, :],  # (1, nOutP)
        "hidden": H,
        "n_out": n_out,
    }


# ------------------------------- Full module --------------------------------
def model_forward(x, prep, *, max_tt=8):
    """Equivalent of BidirectionalLSTM.forward: x (T, B, nIn) -> (T, B, nOut)."""
    T, B, n_in = x.shape
    H = prep["hidden"]

    # Fill the sublanes: pad batch to a multiple of 8 (f32 sublane count).
    bp = max(8, ((B + 7) // 8) * 8)
    x_p = x if bp == B else jnp.pad(x, ((0, 0), (0, bp - B), (0, 0)))
    x_flat = x_p.reshape(T * bp, n_in)             # rows ordered (t, b) -- free view

    tt = _largest_divisor(T, max_tt)               # time block (unrolled in-kernel)
    n_tb = T // tt

    vmem_limit = 32 * 1024 * 1024                  # safe on v7x's 64 MiB VMEM too

    hid = pl.pallas_call(
        functools.partial(_bilstm_kernel, hidden=H, tt=tt, bp=bp),
        out_shape=jax.ShapeDtypeStruct((2, T * bp, H), jnp.float32),
        grid_spec=pltpu.PrefetchScalarGridSpec(
            num_scalar_prefetch=0,
            grid=(2, n_tb),
            in_specs=[
                pl.BlockSpec((tt * bp, n_in),
                             lambda d, tb: (_t_blk(d, tb, n_tb), 0)),
                pl.BlockSpec((1, n_in, 4 * H), lambda d, tb: (d, 0, 0)),
                pl.BlockSpec((1, H, 4 * H), lambda d, tb: (d, 0, 0)),
                pl.BlockSpec((1, 1, 4 * H), lambda d, tb: (d, 0, 0)),
            ],
            out_specs=pl.BlockSpec(
                (1, tt * bp, H), lambda d, tb: (d, _t_blk(d, tb, n_tb), 0)),
            scratch_shapes=[
                pltpu.VMEM((tt * bp, 4 * H), jnp.float32),   # hoisted x-projection
                pltpu.VMEM((bp, H), jnp.float32),            # h carry
                pltpu.VMEM((bp, H), jnp.float32),            # c carry
            ],
        ),
        compiler_params=pltpu.CompilerParams(
            dimension_semantics=("parallel", "arbitrary"),   # 2 dirs -> 2 TCs on v7x
            vmem_limit_bytes=vmem_limit),
    )(x_flat, prep["wih_t"], prep["whh_t"], prep["bias"])

    fwd = hid[0]                                   # (T*bp, H), original time order
    bwd = hid[1]                                   # (T*bp, H), original time order

    n = T * bp
    tm = _largest_divisor(n, 512)
    n_out_p = prep["wf_t"].shape[1]

    out = pl.pallas_call(
        _embed_kernel,
        out_shape=jax.ShapeDtypeStruct((n, n_out_p), jnp.float32),
        grid_spec=pltpu.PrefetchScalarGridSpec(
            num_scalar_prefetch=0,
            grid=(n // tm,),
            in_specs=[
                pl.BlockSpec((tm, H), lambda m: (m, 0)),
                pl.BlockSpec((tm, H), lambda m: (m, 0)),
                pl.BlockSpec((H, n_out_p), lambda m: (0, 0)),
                pl.BlockSpec((H, n_out_p), lambda m: (0, 0)),
                pl.BlockSpec((1, n_out_p), lambda m: (0, 0)),
            ],
            out_specs=pl.BlockSpec((tm, n_out_p), lambda m: (m, 0)),
        ),
        compiler_params=pltpu.CompilerParams(
            dimension_semantics=("parallel",),
            vmem_limit_bytes=vmem_limit),
    )(fwd, bwd, prep["wf_t"], prep["wb_t"], prep["b_emb"])

    # Drop lane padding, restore (T, B, nOut).
    return out[:, :prep["n_out"]].reshape(T, bp, -1)[:, :B, :]


# ------------------------------- Pure-JAX reference --------------------------
def _lstm_ref_dir(x, w_ih, w_hh, b_ih, b_hh, reverse):
    B = x.shape[1]
    H = w_hh.shape[1]

    def step(carry, x_t):
        h, c = carry
        gates = x_t @ w_ih.T + b_ih + h @ w_hh.T + b_hh
        i, f, g, o = jnp.split(gates, 4, axis=-1)
        c = jax.nn.sigmoid(f) * c + jax.nn.sigmoid(i) * jnp.tanh(g)
        h = jax.nn.sigmoid(o) * jnp.tanh(c)
        return (h, c), h

    h0 = jnp.zeros((B, H), jnp.float32)
    xs = x[::-1] if reverse else x
    _, hs = jax.lax.scan(step, (h0, h0), xs)
    return hs[::-1] if reverse else hs


def model_ref(x, p):
    T, B, _ = x.shape
    fwd = _lstm_ref_dir(x, p["w_ih"][0], p["w_hh"][0], p["b_ih"][0],
                        p["b_hh"][0], reverse=False)
    bwd = _lstm_ref_dir(x, p["w_ih"][1], p["w_hh"][1], p["b_ih"][1],
                        p["b_hh"][1], reverse=True)
    rec = jnp.concatenate([fwd, bwd], axis=-1)
    out = rec.reshape(T * B, -1) @ p["w_emb"].T + p["b_emb"]
    return out.reshape(T, B, -1)


# ---------------------------------- Main -------------------------------------
if __name__ == "__main__":
    # Small shapes consistent with the module: input is (T, B, nIn).
    # T=16 with max_tt=8 gives 2 time blocks per direction, exercising the
    # cross-block recurrent-state carry.
    T, B, nIn, H, nOut = 16, 2, 16, 32, 8

    key = jax.random.PRNGKey(0)
    ks = jax.random.split(key, 7)
    k = float(1.0 / (H ** 0.5))   # PyTorch-style uniform(-1/sqrt(H), 1/sqrt(H))
    params = {
        "w_ih": jax.random.uniform(ks[0], (2, 4 * H, nIn), jnp.float32, -k, k),
        "w_hh": jax.random.uniform(ks[1], (2, 4 * H, H), jnp.float32, -k, k),
        "b_ih": jax.random.uniform(ks[2], (2, 4 * H), jnp.float32, -k, k),
        "b_hh": jax.random.uniform(ks[3], (2, 4 * H), jnp.float32, -k, k),
        "w_emb": jax.random.uniform(ks[4], (nOut, 2 * H), jnp.float32, -k, k),
        "b_emb": jax.random.uniform(ks[5], (nOut,), jnp.float32, -k, k),
    }
    x = jax.random.normal(ks[6], (T, B, nIn), dtype=jnp.float32)

    prep = prepare_params(params)   # one-time layout prep (transpose / pad / fuse)

    out = jax.block_until_ready(model_forward(x, prep))
    ref = jax.block_until_ready(model_ref(x, params))

    assert out.shape == (T, B, nOut), out.shape
    max_err = float(jnp.max(jnp.abs(out - ref)))
    assert jnp.allclose(out, ref, rtol=1e-2, atol=1e-2), max_err
    print("KERNEL_OK")
</pallas_src>

<mosaic_0001>
module attributes {stable_mosaic.version = 11 : i64} {
  func.func @_bilstm_kernel(%arg0: i32, %arg1: i32, %arg2: memref<64x16xf32, #tpu.memory_space<vmem>>, %arg3: memref<1x16x128xf32, #tpu.memory_space<vmem>>, %arg4: memref<1x32x128xf32, #tpu.memory_space<vmem>>, %arg5: memref<1x1x128xf32, #tpu.memory_space<vmem>>, %arg6: memref<1x64x32xf32, #tpu.memory_space<vmem>>, %arg7: memref<64x128xf32, #tpu.memory_space<vmem>>, %arg8: memref<8x32xf32, #tpu.memory_space<vmem>>, %arg9: memref<8x32xf32, #tpu.memory_space<vmem>>) attributes {dimension_semantics = [#tpu.dimension_semantics<parallel>, #tpu.dimension_semantics<arbitrary>], iteration_bounds = array<i64: 2, 2>, scalar_prefetch = 0 : i64, scratch_operands = 3 : i64, tpu.core_type = #tpu.core_type<tc>, window_params = [{transform_indices = @transform_0, window_bounds = array<i64: 64, 16>}, {transform_indices = @transform_1, window_bounds = array<i64: 1, 16, 128>}, {transform_indices = @transform_2, window_bounds = array<i64: 1, 32, 128>}, {transform_indices = @transform_3, window_bounds = array<i64: 1, 1, 128>}, {transform_indices = @transform_4, window_bounds = array<i64: 1, 64, 32>}]} {
    %c0_i32 = arith.constant 0 : i32
    %0 = arith.cmpi eq, %arg1, %c0_i32 : i32
    %1 = arith.extui %0 : i1 to i32
    %c0_i32_0 = arith.constant 0 : i32
    %2 = arith.cmpi ne, %1, %c0_i32_0 : i32
    scf.if %2 {
      %cst_79 = arith.constant 0.000000e+00 : f32
      %235 = vector.broadcast %cst_79 : f32 to vector<8x32xf32>
      %c0_80 = arith.constant 0 : index
      %c0_81 = arith.constant 0 : index
      %236 = vector.load %arg8[%c0_80, %c0_81] : memref<8x32xf32, #tpu.memory_space<vmem>>, vector<8x32xf32>
      tpu.vector_store %arg8[%c0_80, %c0_81], %235 {strides = array<i32>} : memref<8x32xf32, #tpu.memory_space<vmem>>, vector<8x32xf32>,
      %cst_82 = arith.constant 0.000000e+00 : f32
      %237 = vector.broadcast %cst_82 : f32 to vector<8x32xf32>
      %c0_83 = arith.constant 0 : index
      %c0_84 = arith.constant 0 : index
      %238 = vector.load %arg9[%c0_83, %c0_84] : memref<8x32xf32, #tpu.memory_space<vmem>>, vector<8x32xf32>
      tpu.vector_store %arg9[%c0_83, %c0_84], %237 {strides = array<i32>} : memref<8x32xf32, #tpu.memory_space<vmem>>, vector<8x32xf32>,
    } else {
    }
    %c0 = arith.constant 0 : index
    %c0_1 = arith.constant 0 : index
    %3 = vector.load %arg2[%c0, %c0_1] : memref<64x16xf32, #tpu.memory_space<vmem>>, vector<64x16xf32>
    %c0_2 = arith.constant 0 : index
    %c0_3 = arith.constant 0 : index
    %c0_4 = arith.constant 0 : index
    %4 = vector.load %arg3[%c0_2, %c0_3, %c0_4] : memref<1x16x128xf32, #tpu.memory_space<vmem>>, vector<1x16x128xf32>
    %5 = vector.shape_cast %4 : vector<1x16x128xf32> to vector<16x128xf32>
    %cst = arith.constant dense<0.000000e+00> : vector<64x128xf32>
    %6 = tpu.matmul %3, %5, %cst {dimension_numbers = #tpu.dot_dimension_numbers<[1], [0], [0], [1], [0, 0, 1, 1], [], []>} : vector<64x16xf32>, vector<16x128xf32>, vector<64x128xf32> -> vector<64x128xf32>
    %c0_5 = arith.constant 0 : index
    %c0_6 = arith.constant 0 : index
    %c0_7 = arith.constant 0 : index
    %7 = vector.load %arg5[%c0_5, %c0_6, %c0_7] : memref<1x1x128xf32, #tpu.memory_space<vmem>>, vector<1x1x128xf32>
    %8 = vector.shape_cast %7 : vector<1x1x128xf32> to vector<1x128xf32>
    %9 = vector.broadcast %8 : vector<1x128xf32> to vector<64x128xf32>
    %10 = arith.addf %6, %9 : vector<64x128xf32>
    %c0_8 = arith.constant 0 : index
    %c0_9 = arith.constant 0 : index
    %11 = vector.load %arg7[%c0_8, %c0_9] : memref<64x128xf32, #tpu.memory_space<vmem>>, vector<64x128xf32>
    tpu.vector_store %arg7[%c0_8, %c0_9], %10 {strides = array<i32>} : memref<64x128xf32, #tpu.memory_space<vmem>>, vector<64x128xf32>,
    %c0_10 = arith.constant 0 : index
    %c0_11 = arith.constant 0 : index
    %c0_12 = arith.constant 0 : index
    %12 = vector.load %arg4[%c0_10, %c0_11, %c0_12] : memref<1x32x128xf32, #tpu.memory_space<vmem>>, vector<1x32x128xf32>
    %13 = vector.shape_cast %12 : vector<1x32x128xf32> to vector<32x128xf32>
    %c0_i32_13 = arith.constant 0 : i32
    %14 = arith.cmpi eq, %arg0, %c0_i32_13 : i32
    %c0_14 = arith.constant 0 : index
    %c0_15 = arith.constant 0 : index
    %15 = vector.load %arg8[%c0_14, %c0_15] : memref<8x32xf32, #tpu.memory_space<vmem>>, vector<8x32xf32>
    %c0_16 = arith.constant 0 : index
    %c0_17 = arith.constant 0 : index
    %16 = vector.load %arg9[%c0_16, %c0_17] : memref<8x32xf32, #tpu.memory_space<vmem>>, vector<8x32xf32>
    %c0_i32_18 = arith.constant 0 : i32
    %c7_i32 = arith.constant 7 : i32
    %17 = arith.subi %c7_i32, %c0_i32_18 : i32
    %18 = arith.select %14, %c0_i32_18, %17 : i32
    %c8_i32 = arith.constant 8 : i32
    %19 = arith.muli %18, %c8_i32 : i32
    %20 = tpu.assume_multiple %19, 8 : i32
    %21 = arith.index_cast %20 : i32 to index
    %c0_19 = arith.constant 0 : index
    %22 = vector.load %arg7[%21, %c0_19] : memref<64x128xf32, #tpu.memory_space<vmem>>, vector<8x128xf32>
    %cst_20 = arith.constant dense<0.000000e+00> : vector<8x128xf32>
    %23 = tpu.matmul %15, %13, %cst_20 {dimension_numbers = #tpu.dot_dimension_numbers<[1], [0], [0], [1], [0, 0, 1, 1], [], []>} : vector<8x32xf32>, vector<32x128xf32>, vector<8x128xf32> -> vector<8x128xf32>
    %24 = arith.addf %22, %23 : vector<8x128xf32>
    %25 = arith.negf %24 : vector<8x128xf32>
    %26 = math.exp %25 : vector<8x128xf32>
    %cst_21 = arith.constant 1.000000e+00 : f32
    %27 = vector.broadcast %cst_21 : f32 to vector<8x128xf32>
    %28 = arith.addf %27, %26 : vector<8x128xf32>
    %29 = arith.divf %27, %28 : vector<8x128xf32>
    %30 = math.tanh %24 : vector<8x128xf32>
    %31 = vector.extract_strided_slice %29 {offsets = [0, 0], sizes = [8, 32], strides = [1, 1]} : vector<8x128xf32> to vector<8x32xf32>
    %32 = vector.extract_strided_slice %29 {offsets = [0, 32], sizes = [8, 32], strides = [1, 1]} : vector<8x128xf32> to vector<8x32xf32>
    %33 = vector.extract_strided_slice %30 {offsets = [0, 64], sizes = [8, 32], strides = [1, 1]} : vector<8x128xf32> to vector<8x32xf32>
    %34 = vector.extract_strided_slice %29 {offsets = [0, 96], sizes = [8, 32], strides = [1, 1]} : vector<8x128xf32> to vector<8x32xf32>
    %35 = arith.mulf %32, %16 : vector<8x32xf32>
    %36 = arith.mulf %31, %33 : vector<8x32xf32>
    %37 = arith.addf %35, %36 : vector<8x32xf32>
    %38 = math.tanh %37 : vector<8x32xf32>
    %39 = arith.mulf %34, %38 : vector<8x32xf32>
    %c0_22 = arith.constant 0 : index
    %40 = arith.index_cast %20 : i32 to index
    %c0_23 = arith.constant 0 : index
    %41 = vector.load %arg6[%c0_22, %40, %c0_23] : memref<1x64x32xf32, #tpu.memory_space<vmem>>, vector<1x8x32xf32>
    %42 = vector.shape_cast %41 : vector<1x8x32xf32> to vector<8x32xf32>
    %43 = vector.shape_cast %39 : vector<8x32xf32> to vector<1x8x32xf32>
    tpu.vector_store %arg6[%c0_22, %40, %c0_23], %43 {strides = array<i32>} : memref<1x64x32xf32, #tpu.memory_space<vmem>>, vector<1x8x32xf32>,
    %c1_i32 = arith.constant 1 : i32
    %c7_i32_24 = arith.constant 7 : i32
    %44 = arith.subi %c7_i32_24, %c1_i32 : i32
    %45 = arith.select %14, %c1_i32, %44 : i32
    %c8_i32_25 = arith.constant 8 : i32
    %46 = arith.muli %45, %c8_i32_25 : i32
    %47 = tpu.assume_multiple %46, 8 : i32
    %48 = arith.index_cast %47 : i32 to index
    %c0_26 = arith.constant 0 : index
    %49 = vector.load %arg7[%48, %c0_26] : memref<64x128xf32, #tpu.memory_space<vmem>>, vector<8x128xf32>
    %cst_27 = arith.constant dense<0.000000e+00> : vector<8x128xf32>
    %50 = tpu.matmul %39, %13, %cst_27 {dimension_numbers = #tpu.dot_dimension_numbers<[1], [0], [0], [1], [0, 0, 1, 1], [], []>} : vector<8x32xf32>, vector<32x128xf32>, vector<8x128xf32> -> vector<8x128xf32>
    %51 = arith.addf %49, %50 : vector<8x128xf32>
    %52 = arith.negf %51 : vector<8x128xf32>
    %53 = math.exp %52 : vector<8x128xf32>
    %cst_28 = arith.constant 1.000000e+00 : f32
    %54 = vector.broadcast %cst_28 : f32 to vector<8x128xf32>
    %55 = arith.addf %54, %53 : vector<8x128xf32>
    %56 = arith.divf %54, %55 : vector<8x128xf32>
    %57 = math.tanh %51 : vector<8x128xf32>
    %58 = vector.extract_strided_slice %56 {offsets = [0, 0], sizes = [8, 32], strides = [1, 1]} : vector<8x128xf32> to vector<8x32xf32>
    %59 = vector.extract_strided_slice %56 {offsets = [0, 32], sizes = [8, 32], strides = [1, 1]} : vector<8x128xf32> to vector<8x32xf32>
    %60 = vector.extract_strided_slice %57 {offsets = [0, 64], sizes = [8, 32], strides = [1, 1]} : vector<8x128xf32> to vector<8x32xf32>
    %61 = vector.extract_strided_slice %56 {offsets = [0, 96], sizes = [8, 32], strides = [1, 1]} : vector<8x128xf32> to vector<8x32xf32>
    %62 = arith.mulf %59, %37 : vector<8x32xf32>
    %63 = arith.mulf %58, %60 : vector<8x32xf32>
    %64 = arith.addf %62, %63 : vector<8x32xf32>
    %65 = math.tanh %64 : vector<8x32xf32>
    %66 = arith.mulf %61, %65 : vector<8x32xf32>
    %c0_29 = arith.constant 0 : index
    %67 = arith.index_cast %47 : i32 to index
    %c0_30 = arith.constant 0 : index
    %68 = vector.load %arg6[%c0_29, %67, %c0_30] : memref<1x64x32xf32, #tpu.memory_space<vmem>>, vector<1x8x32xf32>
    %69 = vector.shape_cast %68 : vector<1x8x32xf32> to vector<8x32xf32>
    %70 = vector.shape_cast %66 : vector<8x32xf32> to vector<1x8x32xf32>
    tpu.vector_store %arg6[%c0_29, %67, %c0_30], %70 {strides = array<i32>} : memref<1x64x32xf32, #tpu.memory_space<vmem>>, vector<1x8x32xf32>,
    %c2_i32 = arith.constant 2 : i32
    %c7_i32_31 = arith.constant 7 : i32
    %71 = arith.subi %c7_i32_31, %c2_i32 : i32
    %72 = arith.select %14, %c2_i32, %71 : i32
    %c8_i32_32 = arith.constant 8 : i32
    %73 = arith.muli %72, %c8_i32_32 : i32
    %74 = tpu.assume_multiple %73, 8 : i32
    %75 = arith.index_cast %74 : i32 to index
    %c0_33 = arith.constant 0 : index
    %76 = vector.load %arg7[%75, %c0_33] : memref<64x128xf32, #tpu.memory_space<vmem>>, vector<8x128xf32>
    %cst_34 = arith.constant dense<0.000000e+00> : vector<8x128xf32>
    %77 = tpu.matmul %66, %13, %cst_34 {dimension_numbers = #tpu.dot_dimension_numbers<[1], [0], [0], [1], [0, 0, 1, 1], [], []>} : vector<8x32xf32>, vector<32x128xf32>, vector<8x128xf32> -> vector<8x128xf32>
    %78 = arith.addf %76, %77 : vector<8x128xf32>
    %79 = arith.negf %78 : vector<8x128xf32>
    %80 = math.exp %79 : vector<8x128xf32>
    %cst_35 = arith.constant 1.000000e+00 : f32
    %81 = vector.broadcast %cst_35 : f32 to vector<8x128xf32>
    %82 = arith.addf %81, %80 : vector<8x128xf32>
    %83 = arith.divf %81, %82 : vector<8x128xf32>
    %84 = math.tanh %78 : vector<8x128xf32>
    %85 = vector.extract_strided_slice %83 {offsets = [0, 0], sizes = [8, 32], strides = [1, 1]} : vector<8x128xf32> to vector<8x32xf32>
    %86 = vector.extract_strided_slice %83 {offsets = [0, 32], sizes = [8, 32], strides = [1, 1]} : vector<8x128xf32> to vector<8x32xf32>
    %87 = vector.extract_strided_slice %84 {offsets = [0, 64], sizes = [8, 32], strides = [1, 1]} : vector<8x128xf32> to vector<8x32xf32>
    %88 = vector.extract_strided_slice %83 {offsets = [0, 96], sizes = [8, 32], strides = [1, 1]} : vector<8x128xf32> to vector<8x32xf32>
    %89 = arith.mulf %86, %64 : vector<8x32xf32>
    %90 = arith.mulf %85, %87 : vector<8x32xf32>
    %91 = arith.addf %89, %90 : vector<8x32xf32>
    %92 = math.tanh %91 : vector<8x32xf32>
    %93 = arith.mulf %88, %92 : vector<8x32xf32>
    %c0_36 = arith.constant 0 : index
    %94 = arith.index_cast %74 : i32 to index
    %c0_37 = arith.constant 0 : index
    %95 = vector.load %arg6[%c0_36, %94, %c0_37] : memref<1x64x32xf32, #tpu.memory_space<vmem>>, vector<1x8x32xf32>
    %96 = vector.shape_cast %95 : vector<1x8x32xf32> to vector<8x32xf32>
    %97 = vector.shape_cast %93 : vector<8x32xf32> to vector<1x8x32xf32>
    tpu.vector_store %arg6[%c0_36, %94, %c0_37], %97 {strides = array<i32>} : memref<1x64x32xf32, #tpu.memory_space<vmem>>, vector<1x8x32xf32>,
    %c3_i32 = arith.constant 3 : i32
    %c7_i32_38 = arith.constant 7 : i32
    %98 = arith.subi %c7_i32_38, %c3_i32 : i32
    %99 = arith.select %14, %c3_i32, %98 : i32
    %c8_i32_39 = arith.constant 8 : i32
    %100 = arith.muli %99, %c8_i32_39 : i32
    %101 = tpu.assume_multiple %100, 8 : i32
    %102 = arith.index_cast %101 : i32 to index
    %c0_40 = arith.constant 0 : index
    %103 = vector.load %arg7[%102, %c0_40] : memref<64x128xf32, #tpu.memory_space<vmem>>, vector<8x128xf32>
    %cst_41 = arith.constant dense<0.000000e+00> : vector<8x128xf32>
    %104 = tpu.matmul %93, %13, %cst_41 {dimension_numbers = #tpu.dot_dimension_numbers<[1], [0], [0], [1], [0, 0, 1, 1], [], []>} : vector<8x32xf32>, vector<32x128xf32>, vector<8x128xf32> -> vector<8x128xf32>
    %105 = arith.addf %103, %104 : vector<8x128xf32>
    %106 = arith.negf %105 : vector<8x128xf32>
    %107 = math.exp %106 : vector<8x128xf32>
    %cst_42 = arith.constant 1.000000e+00 : f32
    %108 = vector.broadcast %cst_42 : f32 to vector<8x128xf32>
    %109 = arith.addf %108, %107 : vector<8x128xf32>
    %110 = arith.divf %108, %109 : vector<8x128xf32>
    %111 = math.tanh %105 : vector<8x128xf32>
    %112 = vector.extract_strided_slice %110 {offsets = [0, 0], sizes = [8, 32], strides = [1, 1]} : vector<8x128xf32> to vector<8x32xf32>
    %113 = vector.extract_strided_slice %110 {offsets = [0, 32], sizes = [8, 32], strides = [1, 1]} : vector<8x128xf32> to vector<8x32xf32>
    %114 = vector.extract_strided_slice %111 {offsets = [0, 64], sizes = [8, 32], strides = [1, 1]} : vector<8x128xf32> to vector<8x32xf32>
    %115 = vector.extract_strided_slice %110 {offsets = [0, 96], sizes = [8, 32], strides = [1, 1]} : vector<8x128xf32> to vector<8x32xf32>
    %116 = arith.mulf %113, %91 : vector<8x32xf32>
    %117 = arith.mulf %112, %114 : vector<8x32xf32>
    %118 = arith.addf %116, %117 : vector<8x32xf32>
    %119 = math.tanh %118 : vector<8x32xf32>
    %120 = arith.mulf %115, %119 : vector<8x32xf32>
    %c0_43 = arith.constant 0 : index
    %121 = arith.index_cast %101 : i32 to index
    %c0_44 = arith.constant 0 : index
    %122 = vector.load %arg6[%c0_43, %121, %c0_44] : memref<1x64x32xf32, #tpu.memory_space<vmem>>, vector<1x8x32xf32>
    %123 = vector.shape_cast %122 : vector<1x8x32xf32> to vector<8x32xf32>
    %124 = vector.shape_cast %120 : vector<8x32xf32> to vector<1x8x32xf32>
    tpu.vector_store %arg6[%c0_43, %121, %c0_44], %124 {strides = array<i32>} : memref<1x64x32xf32, #tpu.memory_space<vmem>>, vector<1x8x32xf32>,
    %c4_i32 = arith.constant 4 : i32
    %c7_i32_45 = arith.constant 7 : i32
    %125 = arith.subi %c7_i32_45, %c4_i32 : i32
    %126 = arith.select %14, %c4_i32, %125 : i32
    %c8_i32_46 = arith.constant 8 : i32
    %127 = arith.muli %126, %c8_i32_46 : i32
    %128 = tpu.assume_multiple %127, 8 : i32
    %129 = arith.index_cast %128 : i32 to index
    %c0_47 = arith.constant 0 : index
    %130 = vector.load %arg7[%129, %c0_47] : memref<64x128xf32, #tpu.memory_space<vmem>>, vector<8x128xf32>
    %cst_48 = arith.constant dense<0.000000e+00> : vector<8x128xf32>
    %131 = tpu.matmul %120, %13, %cst_48 {dimension_numbers = #tpu.dot_dimension_numbers<[1], [0], [0], [1], [0, 0, 1, 1], [], []>} : vector<8x32xf32>, vector<32x128xf32>, vector<8x128xf32> -> vector<8x128xf32>
    %132 = arith.addf %130, %131 : vector<8x128xf32>
    %133 = arith.negf %132 : vector<8x128xf32>
    %134 = math.exp %133 : vector<8x128xf32>
    %cst_49 = arith.constant 1.000000e+00 : f32
    %135 = vector.broadcast %cst_49 : f32 to vector<8x128xf32>
    %136 = arith.addf %135, %134 : vector<8x128xf32>
    %137 = arith.divf %135, %136 : vector<8x128xf32>
    %138 = math.tanh %132 : vector<8x128xf32>
    %139 = vector.extract_strided_slice %137 {offsets = [0, 0], sizes = [8, 32], strides = [1, 1]} : vector<8x128xf32> to vector<8x32xf32>
    %140 = vector.extract_strided_slice %137 {offsets = [0, 32], sizes = [8, 32], strides = [1, 1]} : vector<8x128xf32> to vector<8x32xf32>
    %141 = vector.extract_strided_slice %138 {offsets = [0, 64], sizes = [8, 32], strides = [1, 1]} : vector<8x128xf32> to vector<8x32xf32>
    %142 = vector.extract_strided_slice %137 {offsets = [0, 96], sizes = [8, 32], strides = [1, 1]} : vector<8x128xf32> to vector<8x32xf32>
    %143 = arith.mulf %140, %118 : vector<8x32xf32>
    %144 = arith.mulf %139, %141 : vector<8x32xf32>
    %145 = arith.addf %143, %144 : vector<8x32xf32>
    %146 = math.tanh %145 : vector<8x32xf32>
    %147 = arith.mulf %142, %146 : vector<8x32xf32>
    %c0_50 = arith.constant 0 : index
    %148 = arith.index_cast %128 : i32 to index
    %c0_51 = arith.constant 0 : index
    %149 = vector.load %arg6[%c0_50, %148, %c0_51] : memref<1x64x32xf32, #tpu.memory_space<vmem>>, vector<1x8x32xf32>
    %150 = vector.shape_cast %149 : vector<1x8x32xf32> to vector<8x32xf32>
    %151 = vector.shape_cast %147 : vector<8x32xf32> to vector<1x8x32xf32>
    tpu.vector_store %arg6[%c0_50, %148, %c0_51], %151 {strides = array<i32>} : memref<1x64x32xf32, #tpu.memory_space<vmem>>, vector<1x8x32xf32>,
    %c5_i32 = arith.constant 5 : i32
    %c7_i32_52 = arith.constant 7 : i32
    %152 = arith.subi %c7_i32_52, %c5_i32 : i32
    %153 = arith.select %14, %c5_i32, %152 : i32
    %c8_i32_53 = arith.constant 8 : i32
    %154 = arith.muli %153, %c8_i32_53 : i32
    %155 = tpu.assume_multiple %154, 8 : i32
    %156 = arith.index_cast %155 : i32 to index
    %c0_54 = arith.constant 0 : index
    %157 = vector.load %arg7[%156, %c0_54] : memref<64x128xf32, #tpu.memory_space<vmem>>, vector<8x128xf32>
    %cst_55 = arith.constant dense<0.000000e+00> : vector<8x128xf32>
    %158 = tpu.matmul %147, %13, %cst_55 {dimension_numbers = #tpu.dot_dimension_numbers<[1], [0], [0], [1], [0, 0, 1, 1], [], []>} : vector<8x32xf32>, vector<32x128xf32>, vector<8x128xf32> -> vector<8x128xf32>
    %159 = arith.addf %157, %158 : vector<8x128xf32>
    %160 = arith.negf %159 : vector<8x128xf32>
    %161 = math.exp %160 : vector<8x128xf32>
    %cst_56 = arith.constant 1.000000e+00 : f32
    %162 = vector.broadcast %cst_56 : f32 to vector<8x128xf32>
    %163 = arith.addf %162, %161 : vector<8x128xf32>
    %164 = arith.divf %162, %163 : vector<8x128xf32>
    %165 = math.tanh %159 : vector<8x128xf32>
    %166 = vector.extract_strided_slice %164 {offsets = [0, 0], sizes = [8, 32], strides = [1, 1]} : vector<8x128xf32> to vector<8x32xf32>
    %167 = vector.extract_strided_slice %164 {offsets = [0, 32], sizes = [8, 32], strides = [1, 1]} : vector<8x128xf32> to vector<8x32xf32>
    %168 = vector.extract_strided_slice %165 {offsets = [0, 64], sizes = [8, 32], strides = [1, 1]} : vector<8x128xf32> to vector<8x32xf32>
    %169 = vector.extract_strided_slice %164 {offsets = [0, 96], sizes = [8, 32], strides = [1, 1]} : vector<8x128xf32> to vector<8x32xf32>
    %170 = arith.mulf %167, %145 : vector<8x32xf32>
    %171 = arith.mulf %166, %168 : vector<8x32xf32>
    %172 = arith.addf %170, %171 : vector<8x32xf32>
    %173 = math.tanh %172 : vector<8x32xf32>
    %174 = arith.mulf %169, %173 : vector<8x32xf32>
    %c0_57 = arith.constant 0 : index
    %175 = arith.index_cast %155 : i32 to index
    %c0_58 = arith.constant 0 : index
    %176 = vector.load %arg6[%c0_57, %175, %c0_58] : memref<1x64x32xf32, #tpu.memory_space<vmem>>, vector<1x8x32xf32>
    %177 = vector.shape_cast %176 : vector<1x8x32xf32> to vector<8x32xf32>
    %178 = vector.shape_cast %174 : vector<8x32xf32> to vector<1x8x32xf32>
    tpu.vector_store %arg6[%c0_57, %175, %c0_58], %178 {strides = array<i32>} : memref<1x64x32xf32, #tpu.memory_space<vmem>>, vector<1x8x32xf32>,
    %c6_i32 = arith.constant 6 : i32
    %c7_i32_59 = arith.constant 7 : i32
    %179 = arith.subi %c7_i32_59, %c6_i32 : i32
    %180 = arith.select %14, %c6_i32, %179 : i32
    %c8_i32_60 = arith.constant 8 : i32
    %181 = arith.muli %180, %c8_i32_60 : i32
    %182 = tpu.assume_multiple %181, 8 : i32
    %183 = arith.index_cast %182 : i32 to index
    %c0_61 = arith.constant 0 : index
    %184 = vector.load %arg7[%183, %c0_61] : memref<64x128xf32, #tpu.memory_space<vmem>>, vector<8x128xf32>
    %cst_62 = arith.constant dense<0.000000e+00> : vector<8x128xf32>
    %185 = tpu.matmul %174, %13, %cst_62 {dimension_numbers = #tpu.dot_dimension_numbers<[1], [0], [0], [1], [0, 0, 1, 1], [], []>} : vector<8x32xf32>, vector<32x128xf32>, vector<8x128xf32> -> vector<8x128xf32>
    %186 = arith.addf %184, %185 : vector<8x128xf32>
    %187 = arith.negf %186 : vector<8x128xf32>
    %188 = math.exp %187 : vector<8x128xf32>
    %cst_63 = arith.constant 1.000000e+00 : f32
    %189 = vector.broadcast %cst_63 : f32 to vector<8x128xf32>
    %190 = arith.addf %189, %188 : vector<8x128xf32>
    %191 = arith.divf %189, %190 : vector<8x128xf32>
    %192 = math.tanh %186 : vector<8x128xf32>
    %193 = vector.extract_strided_slice %191 {offsets = [0, 0], sizes = [8, 32], strides = [1, 1]} : vector<8x128xf32> to vector<8x32xf32>
    %194 = vector.extract_strided_slice %191 {offsets = [0, 32], sizes = [8, 32], strides = [1, 1]} : vector<8x128xf32> to vector<8x32xf32>
    %195 = vector.extract_strided_slice %192 {offsets = [0, 64], sizes = [8, 32], strides = [1, 1]} : vector<8x128xf32> to vector<8x32xf32>
    %196 = vector.extract_strided_slice %191 {offsets = [0, 96], sizes = [8, 32], strides = [1, 1]} : vector<8x128xf32> to vector<8x32xf32>
    %197 = arith.mulf %194, %172 : vector<8x32xf32>
    %198 = arith.mulf %193, %195 : vector<8x32xf32>
    %199 = arith.addf %197, %198 : vector<8x32xf32>
    %200 = math.tanh %199 : vector<8x32xf32>
    %201 = arith.mulf %196, %200 : vector<8x32xf32>
    %c0_64 = arith.constant 0 : index
    %202 = arith.index_cast %182 : i32 to index
    %c0_65 = arith.constant 0 : index
    %203 = vector.load %arg6[%c0_64, %202, %c0_65] : memref<1x64x32xf32, #tpu.memory_space<vmem>>, vector<1x8x32xf32>
    %204 = vector.shape_cast %203 : vector<1x8x32xf32> to vector<8x32xf32>
    %205 = vector.shape_cast %201 : vector<8x32xf32> to vector<1x8x32xf32>
    tpu.vector_store %arg6[%c0_64, %202, %c0_65], %205 {strides = array<i32>} : memref<1x64x32xf32, #tpu.memory_space<vmem>>, vector<1x8x32xf32>,
    %c7_i32_66 = arith.constant 7 : i32
    %c7_i32_67 = arith.constant 7 : i32
    %206 = arith.subi %c7_i32_67, %c7_i32_66 : i32
    %207 = arith.select %14, %c7_i32_66, %206 : i32
    %c8_i32_68 = arith.constant 8 : i32
    %208 = arith.muli %207, %c8_i32_68 : i32
    %209 = tpu.assume_multiple %208, 8 : i32
    %210 = arith.index_cast %209 : i32 to index
    %c0_69 = arith.constant 0 : index
    %211 = vector.load %arg7[%210, %c0_69] : memref<64x128xf32, #tpu.memory_space<vmem>>, vector<8x128xf32>
    %cst_70 = arith.constant dense<0.000000e+00> : vector<8x128xf32>
    %212 = tpu.matmul %201, %13, %cst_70 {dimension_numbers = #tpu.dot_dimension_numbers<[1], [0], [0], [1], [0, 0, 1, 1], [], []>} : vector<8x32xf32>, vector<32x128xf32>, vector<8x128xf32> -> vector<8x128xf32>
    %213 = arith.addf %211, %212 : vector<8x128xf32>
    %214 = arith.negf %213 : vector<8x128xf32>
    %215 = math.exp %214 : vector<8x128xf32>
    %cst_71 = arith.constant 1.000000e+00 : f32
    %216 = vector.broadcast %cst_71 : f32 to vector<8x128xf32>
    %217 = arith.addf %216, %215 : vector<8x128xf32>
    %218 = arith.divf %216, %217 : vector<8x128xf32>
    %219 = math.tanh %213 : vector<8x128xf32>
    %220 = vector.extract_strided_slice %218 {offsets = [0, 0], sizes = [8, 32], strides = [1, 1]} : vector<8x128xf32> to vector<8x32xf32>
    %221 = vector.extract_strided_slice %218 {offsets = [0, 32], sizes = [8, 32], strides = [1, 1]} : vector<8x128xf32> to vector<8x32xf32>
    %222 = vector.extract_strided_slice %219 {offsets = [0, 64], sizes = [8, 32], strides = [1, 1]} : vector<8x128xf32> to vector<8x32xf32>
    %223 = vector.extract_strided_slice %218 {offsets = [0, 96], sizes = [8, 32], strides = [1, 1]} : vector<8x128xf32> to vector<8x32xf32>
    %224 = arith.mulf %221, %199 : vector<8x32xf32>
    %225 = arith.mulf %220, %222 : vector<8x32xf32>
    %226 = arith.addf %224, %225 : vector<8x32xf32>
    %227 = math.tanh %226 : vector<8x32xf32>
    %228 = arith.mulf %223, %227 : vector<8x32xf32>
    %c0_72 = arith.constant 0 : index
    %229 = arith.index_cast %209 : i32 to index
    %c0_73 = arith.constant 0 : index
    %230 = vector.load %arg6[%c0_72, %229, %c0_73] : memref<1x64x32xf32, #tpu.memory_space<vmem>>, vector<1x8x32xf32>
    %231 = vector.shape_cast %230 : vector<1x8x32xf32> to vector<8x32xf32>
    %232 = vector.shape_cast %228 : vector<8x32xf32> to vector<1x8x32xf32>
    tpu.vector_store %arg6[%c0_72, %229, %c0_73], %232 {strides = array<i32>} : memref<1x64x32xf32, #tpu.memory_space<vmem>>, vector<1x8x32xf32>,
    %c8_i32_74 = arith.constant 8 : i32
    %c0_75 = arith.constant 0 : index
    %c0_76 = arith.constant 0 : index
    %233 = vector.load %arg8[%c0_75, %c0_76] : memref<8x32xf32, #tpu.memory_space<vmem>>, vector<8x32xf32>
    tpu.vector_store %arg8[%c0_75, %c0_76], %228 {strides = array<i32>} : memref<8x32xf32, #tpu.memory_space<vmem>>, vector<8x32xf32>,
    %c0_77 = arith.constant 0 : index
    %c0_78 = arith.constant 0 : index
    %234 = vector.load %arg9[%c0_77, %c0_78] : memref<8x32xf32, #tpu.memory_space<vmem>>, vector<8x32xf32>
    tpu.vector_store %arg9[%c0_77, %c0_78], %226 {strides = array<i32>} : memref<8x32xf32, #tpu.memory_space<vmem>>, vector<8x32xf32>,
    return
  }
  func.func @transform_0(%arg0: i32, %arg1: i32) -> (i32, i32) {
    %c0_i32 = arith.constant 0 : i32
    %0 = arith.cmpi eq, %arg0, %c0_i32 : i32
    %c1_i32 = arith.constant 1 : i32
    %1 = arith.subi %c1_i32, %arg1 : i32
    %2 = arith.select %0, %arg1, %1 : i32
    %c0_i32_0 = arith.constant 0 : i32
    %c0_i32_1 = arith.constant 0 : i32
    return %2, %c0_i32_0 : i32, i32
  }
  func.func @transform_1(%arg0: i32, %arg1: i32) -> (i32, i32, i32) {
    %c0_i32 = arith.constant 0 : i32
    %c0_i32_0 = arith.constant 0 : i32
    %c0_i32_1 = arith.constant 0 : i32
    return %arg0, %c0_i32, %c0_i32_0 : i32, i32, i32
  }
  func.func @transform_2(%arg0: i32, %arg1: i32) -> (i32, i32, i32) {
    %c0_i32 = arith.constant 0 : i32
    %c0_i32_0 = arith.constant 0 : i32
    %c0_i32_1 = arith.constant 0 : i32
    return %arg0, %c0_i32, %c0_i32_0 : i32, i32, i32
  }
  func.func @transform_3(%arg0: i32, %arg1: i32) -> (i32, i32, i32) {
    %c0_i32 = arith.constant 0 : i32
    %c0_i32_0 = arith.constant 0 : i32
    %c0_i32_1 = arith.constant 0 : i32
    return %arg0, %c0_i32, %c0_i32_0 : i32, i32, i32
  }
  func.func @transform_4(%arg0: i32, %arg1: i32) -> (i32, i32, i32) {
    %c0_i32 = arith.constant 0 : i32
    %0 = arith.cmpi eq, %arg0, %c0_i32 : i32
    %c1_i32 = arith.constant 1 : i32
    %1 = arith.subi %c1_i32, %arg1 : i32
    %2 = arith.select %0, %arg1, %1 : i32
    %c0_i32_0 = arith.constant 0 : i32
    %c0_i32_1 = arith.constant 0 : i32
    return %arg0, %2, %c0_i32_0 : i32, i32, i32
  }
}

</mosaic_0001>

<bundles_post_ra>
// kernel: tpu_custom_call.1
= control target key start
LH: loop header
LB: loop body
LE: loop exit
PB: predicated region body
PF: predicated region fallthrough
CT: control target
= control target key end

     0   :  { %s1895_s15 = smov 0   ;;  %s1897_s16 = smov 0   ;;  %s2198_s0 = inlined_call_operand.vmem [shape: f32[128,16], index: 0, kind: input, shape index: {}]   ;;  %s2199_s1 = inlined_call_operand.vmem [shape: f32[2,16,128], index: 1, kind: input, shape index: {}]   ;;  %s2200_s2 = inlined_call_operand.vmem [shape: f32[2,32,128], index: 2, kind: input, shape index: {}]   ;;  %s2201_s3 = inlined_call_operand.vmem [shape: f32[2,1,128], index: 3, kind: input, shape index: {}]   ;;  %s2202_s4 = inlined_call_operand.vmem [shape: f32[2,128,32], index: 4, kind: output, shape index: {}]  }
   0x1   :  { %2203 = sst [smem:[#allocation5_spill]] %s2199_s1  ;;  %s1899_s17 = smov 0  }
   0x2   :  { %s1901_s18 = smov 0   ;;  %s1903_s19 = smov 0  }
   0x3 LB: > { %s23_s20 = sadd.s32 1, %s1854_s17  ;;  %s26_s21 = sadd.s32 1, %s1858_s18  ;;  %s1862_s19 = sphi %s1903_s19, %s14_s19   ;;  %s1858_s18 = sphi %s1901_s18, %s2208_s18   ;;  %s1854_s17 = sphi %s1899_s17, %s2207_s17   ;;  %s1850_s16 = sphi %s1897_s16, %s2206_s16   ;;  %s1846_s15 = sphi %s1895_s15, %s2205_s15  }
   0x4   : > { %p24_p0 = scmp.ge.s32.totalorder %s23_s20, 2  ;;  %p1512_p1 = scmp.ge.s32.totalorder %s1862_s19, 1 }
   0x5   : > { %p223_p2 = scmp.lt.s32.totalorder %s1862_s19, 5 }
   0x6   : > { %s2210_s20 = smov (%p24_p0, %s23_s20), 0  ;;  %s2212_s21 = smov (!%p24_p0, %s26_s21), %s1858_s18 }
   0x7   : > { %p224_p3 = pnand %p1512_p1, %p223_p2  ;;  %p28_p4 = scmp.ge.s32.totalorder %s2212_s21, 2 }
   0x8   : > { %p272_p5 = scmp.eq.s32.totalorder (!%p224_p3), %s1850_s16, 0  ;;  %s273_s22 = ssub.s32 (!%p224_p3), 1, %s1846_s15 }
   0x9   : > { %s2214_s21 = smov (%p28_p4, %s2212_s21), 0  ;;  %227 = sbr.rel (%p224_p3) target bundleno = 5571 (0x15c3), region = 36 }
   0xa   : > { %p284_p6 = scmp.lt.s32.totalorder (!%p224_p3), %s1850_s16, 1  ;;  %s2204_s1 = sld [smem:[#allocation5_spill]] (!%p224_p3) }
   0xb   : > { %p1522_p8 = scmp.ne.s32.totalorder (!%p224_p3), %s1846_s15, 0 }
   0xe   : > { %s274_s23 = scalar_select %p272_p5, %s1846_s15, %s273_s22 }
   0xf   : > { %s1936_s24 = scalar_select %p284_p6, %s1850_s16, 1 }
  0x10   : > { %s1513_s25 = sshll.u32 %s274_s23, 3 }
  0x11   : > { %p276_p7 = scmp.lt.s32.totalorder %s1513_s25, 15  ;;  %s1558_s26 = sshll.u32 %s1936_s24, 4 }
  0x12   : > { %s288_s29 = scalar_lea.vmem %s2204_s1, %s1558_s26  ;;  %s1559_s30 = sshll.u32 %s1936_s24, 5 }
  0x13   : > { %s2216_s25 = smov (!%p276_p7, %s1513_s25), 15  ;;  %s1946_s7 = scalar_lea.vmem %s2200_s2, %s1559_s30 }
  0x14   : > { %s296_s10 = scalar_lea.vmem %s2201_s3, %s1936_s24  ;;  %s1514_s11 = sshll.u32 %s2216_s25, 3 }
  0x15   : > { %s306_s12 = sadd.s32 %s1558_s26, %s2216_s25  ;;  %s1955_s22 = scalar_lea.vmem %s2198_s0, %s1514_s11 }
  0x16   : > { %s1521_s23 = sshll.u32 %s306_s12, 3  ;;  %316 = sbr.rel (%p1522_p8) target bundleno = 29 (0x1d), region = 40 }
  0x17   : > { %s1960_s1 = scalar_lea.vmem %s2202_s4, %s1521_s23 }
  0x1b   : > { %vm317_vm0 = vcmask 261120   ;;  %v1864_v0 = vmov 0.0  }
  0x1c   : > { %318 = vst.msk [vmem:[#allocation3] sm:$0xff] %vm317_vm0, %v1864_v0  ;;  %319 = vst.msk [vmem:[#allocation4] sm:$0xff] %vm317_vm0, %v1864_v0 }
  0x1d PF: > { %v329_v1 = vld [vmem:[%s288_s29 + $0x8] sm:$0xff]  ;;  %v328_v2 = vld [vmem:[%s288_s29] sm:$0xff]  ;;  %vm337_vm1 = vcmask 130048   ;;  %v1865_v5 = vmov 0.0   ;;  %v322_v6 = vld [vmem:[%s1955_s22 + $0x10] sm:$0xff]  ;;  %vm1866_vm2 = vmmov 0  }
  0x1e   : > { %v320_v3 = vld [vmem:[%s1955_s22] sm:$0xff]  ;;  %1610 = vmatprep.subr.mxu0 %v329_v1  ;;  %v321_v4 = vld [vmem:[%s1955_s22 + $0x8] sm:$0xff]  ;;  %1626 = vmatprep.subr.mxu1 %v1865_v5  ;;  %v1969_v7 = vld [vmem:[%s1946_s7 + $0x18] sm:$0xff]  ;;  %vm486_vm3 = vcmask 261120   ;;  %s2031_s24 = scalar_select %p272_p5, 0, 7 }
  0x1f   : > { %1614 = vmatprep.mubr.msk.f32.mxu0 %vm337_vm1, %v320_v3  ;;  %1611 = vmatpush3.msra.mxu0 %v329_v1  ;;  %v1972_v8 = vld [vmem:[%s1946_s7 + $0x10] sm:$0xff]  ;;  %v1980_v9 = vld [vmem:[%s1946_s7 + $0x8] sm:$0xff]  ;;  %v323_v10 = vld [vmem:[%s1955_s22 + $0x18] sm:$0xff]  ;;  %s1867_s30 = smov 64   ;;  %s1868_s5 = smov 32  }
  0x20   : > { %1612 = vmatprep.subr.mxu0 %v328_v2  ;;  %1634 = vmatprep.mubr.msk.f32.mxu1 %vm1866_vm2, %v1865_v5  ;;  %v324_v11 = vld [vmem:[%s1955_s22 + $0x20] sm:$0xff]  ;;  %v325_v14 = vld [vmem:[%s1955_s22 + $0x28] sm:$0xff]  ;;  %v326_v15 = vld [vmem:[%s1955_s22 + $0x30] sm:$0xff]  ;;  %s1532_s26 = sshll.u32 %s2031_s24, 3  ;;  %s1869_s16 = smov 96  }
  0x21   : > { %1613 = vmatpush3.msra.mxu0 %v328_v2  ;;  %1627 = vmatpush3.msra.mxu1 %v1969_v7  ;;  %v1988_v12 = vld [vmem:[%s1946_s7] sm:$0xff]  ;;  %v327_v16 = vld [vmem:[%s1955_s22 + $0x38] sm:$0xff]  ;;  %s484_s29 = scalar_lea.vmem [#allocation2], %s1532_s26  ;;  %s593_s6 = scalar_lea.vmem %s1960_s1, %s1532_s26 }
  0x22   : > { %1615 = vmatmul.mubr.msk.f32.vlgmr.msra.gmra.mxu0 %vm337_vm1, %v321_v4  ;;  %1628 = vmatprep.subr.mxu1 %v1865_v5  ;;  %v1523_v17 = vld [vmem:[%s296_s10] ss:$0 sm:$0xff]  ;;  %s2058_s7 = scalar_select %p272_p5, 1, 6 }
  0x23   : > { %1617 = vmatprep.mubr.msk.f32.mxu0 %vm337_vm1, %v322_v6  ;;  %1629 = vmatpush3.msra.mxu1 %v1972_v8  ;;  %v480_v13 = vld [vmem:[#allocation3] sm:$0xff]  ;;  %v481_v39 = vld [vmem:[#allocation4] sm:$0xff]  ;;  %s2080_s11 = scalar_select %p272_p5, 2, 5 }
  0x24   : > { %1630 = vmatprep.subr.mxu1 %v1865_v5  ;;  %1648 = vmatprep.subr.mxu0 %v1865_v5  ;;  %s1535_s8 = sshll.u32 %s2058_s7, 3 }
  0x25   : > { %1631 = vmatpush3.msra.mxu1 %v1980_v9  ;;  %1649 = vmatpush3.msra.mxu0 %v1969_v7  ;;  %s597_s9 = scalar_lea.vmem [#allocation2], %s1535_s8  ;;  %s700_s10 = scalar_lea.vmem %s1960_s1, %s1535_s8 }
  0x26   : > { %1618 = vmatmul.mubr.msk.f32.gmra.mxu0 %vm337_vm1, %v323_v10  ;;  %1632 = vmatprep.subr.mxu1 %v1865_v5  ;;  %s1538_s12 = sshll.u32 %s2080_s11, 3 }
  0x27   : > { %1620 = vmatprep.mubr.msk.f32.mxu0 %vm337_vm1, %v324_v11  ;;  %1633 = vmatpush3.msra.mxu1 %v1988_v12  ;;  %s704_s13 = scalar_lea.vmem [#allocation2], %s1538_s12  ;;  %s807_s14 = scalar_lea.vmem %s1960_s1, %s1538_s12 }
  0x28   : > { %1635 = vmatmul.mubr.msk.f32.vlgmr.msra.gmra.mxu1 %vm486_vm3, %v480_v13  ;;  %1637 = vmatprep.subr.mxu1 %v1865_v5  ;;  %s2102_s22 = scalar_select %p272_p5, 3, 4 }
  0x29   : > { %1638 = vmatpush3.msra.mxu1 %v1969_v7  ;;  %1645 = vmatprep.mubr.msk.f32.mxu1 %vm1866_vm2, %v1865_v5  ;;  %s2123_s15 = scalar_select %p272_p5, 4, 3 }
  0x2a   : > { %1621 = vmatmul.mubr.msk.f32.gmra.mxu0 %vm337_vm1, %v325_v14  ;;  %1639 = vmatprep.subr.mxu1 %v1865_v5  ;;  %s1541_s23 = sshll.u32 %s2102_s22, 3 }
  0x2b   : > { %1623 = vmatprep.mubr.msk.f32.mxu0 %vm337_vm1, %v326_v15  ;;  %1640 = vmatpush3.msra.mxu1 %v1972_v8  ;;  %s811_s27 = scalar_lea.vmem [#allocation2], %s1541_s23  ;;  %s914_s28 = scalar_lea.vmem %s1960_s1, %s1541_s23 }
  0x2c   : > { %1641 = vmatprep.subr.mxu1 %v1865_v5  ;;  %1650 = vmatprep.subr.mxu0 %v1865_v5  ;;  %s1544_s25 = sshll.u32 %s2123_s15, 3 }
  0x2d   : > { %1642 = vmatpush3.msra.mxu1 %v1980_v9  ;;  %1651 = vmatpush3.msra.mxu0 %v1972_v8  ;;  %s918_s24 = scalar_lea.vmem [#allocation2], %s1544_s25  ;;  %s1021_s26 = scalar_lea.vmem %s1960_s1, %s1544_s25 }
  0x2e   : > { %1624 = vmatmul.mubr.msk.f32.gmra.mxu0 %vm337_vm1, %v327_v16  ;;  %1643 = vmatprep.subr.mxu1 %v1865_v5 }
  0x2f   : > { %1644 = vmatpush3.msra.mxu1 %v1988_v12  ;;  %1652 = vmatprep.subr.mxu0 %v1865_v5 }
  0x30   : > { %1653 = vmatpush3.msra.mxu0 %v1980_v9  ;;  %1656 = vmatprep.mubr.msk.f32.mxu0 %vm1866_vm2, %v1865_v5 }
  0x31   : > { %1654 = vmatprep.subr.mxu0 %v1865_v5  ;;  %1659 = vmatprep.subr.mxu1 %v1865_v5 }
  0x32   : > { %1655 = vmatpush3.msra.mxu0 %v1988_v12 }
  0x33   : > { %1670 = vmatprep.subr.mxu0 %v1865_v5 }
  0xe2   : > { %v1616_v18 = vpop.f32.mrf.mxu0 }
  0xe3   : > { %v434_v19 = vadd.f32 %v1616_v18, %v1523_v17 }
  0xe4   : > { %v428_v20 = vpop.f32.mrf.mxu0 }
  0xe5   : > { %468 = vst [vmem:[#allocation2 + $0x8] sm:$0xff] %v434_v19  ;;  %v429_v21 = vadd.f32 %v1523_v17, %v428_v20 }
  0xe6   : > { %v1619_v22 = vpop.f32.mrf.mxu0 }
  0xe7   : > { %467 = vst [vmem:[#allocation2] sm:$0xff] %v429_v21  ;;  %v444_v23 = vadd.f32 %v1619_v22, %v1523_v17 }
  0xe8   : > { %v438_v24 = vpop.f32.mrf.mxu0  ;;  %v556_v25 = vpop.f32.mrf.mxu1 }
  0xe9   : > { %470 = vst [vmem:[#allocation2 + $0x18] sm:$0xff] %v444_v23  ;;  %v439_v26 = vadd.f32 %v1523_v17, %v438_v24 }
  0xea   : > { %v1622_v27 = vpop.f32.mrf.mxu0  ;;  %v1636_v28 = vpop.f32.mrf.mxu1 }
  0xeb   : > { %469 = vst [vmem:[#allocation2 + $0x10] sm:$0xff] %v439_v26  ;;  %v454_v29 = vadd.f32 %v1622_v27, %v1523_v17 }
  0xec   : > { %v448_v30 = vpop.f32.mrf.mxu0 }
  0xed   : > { %472 = vst [vmem:[#allocation2 + $0x28] sm:$0xff] %v454_v29  ;;  %v449_v31 = vadd.f32 %v1523_v17, %v448_v30 }
  0xee   : > { %v1625_v32 = vpop.f32.mrf.mxu0 }
  0xef   : > { %471 = vst [vmem:[#allocation2 + $0x20] sm:$0xff] %v449_v31  ;;  %v464_v33 = vadd.f32 %v1625_v32, %v1523_v17 }
  0xf0   : > { %v458_v34 = vpop.f32.mrf.mxu0 }
  0xf1   : > { %474 = vst [vmem:[#allocation2 + $0x38] sm:$0xff] %v464_v33  ;;  %v459_v35 = vadd.f32 %v1523_v17, %v458_v34 }
  0xf3   : > { %473 = vst [vmem:[#allocation2 + $0x30] sm:$0xff] %v459_v35 }
  0xfa   : > { %v485_v36 = vld [vmem:[%s484_s29] sm:$0xff]  ;;  %s2144_s29 = scalar_select %p272_p5, 5, 2 }
  0xfb   : > { %v560_v37 = vadd.f32 %v556_v25, %v485_v36  ;;  %v598_v54 = vld [vmem:[%s597_s9] sm:$0xff]  ;;  %s2156_s9 = scalar_select %p272_p5, 6, 1 }
  0xfc   : > { %v705_v13 = vld [vmem:[%s704_s13] sm:$0xff]  ;;  %s2168_s13 = scalar_select %p272_p5, 7, 0 }
  0xfd   : > { %1760 = vtanh.f32 %v560_v37  ;;  %v1534_v40 = vmul.f32 -1.442695, %v560_v37  ;;  %v812_v31 = vld [vmem:[%s811_s27] sm:$0xff] }
  0xff   : > { %1762 = vpow2.f32 %v1534_v40 }
 0x10a   : > { %v1761_v38 = vpop.eup %1760 }
 0x10b   : > { %574 = vrot.lane.b32.xlu0 %v1761_v38, %s1867_s30 }
 0x10c   : > { %v1763_v41 = vpop.eup %1762 }
 0x10d   : > { %v564_v42 = vadd.f32 1.0, %v1763_v41 }
 0x10f   : > { %569 = vrot.lane.b32.xlu0 %v481_v39, %s1868_s5  ;;  %1764 = vrcp.f32 %v564_v42 }
 0x11c   : > { %v1765_v43 = vpop.eup %1764 }
 0x17d   : > { %v575_v44 = vpop.permute.xlu0 %574 }
 0x17e   : > { %v577_v45 = vmul.f32 %v1765_v43, %v575_v44 }
 0x180   : > { %579 = vrot.lane.b32.xlu1 %v577_v45, %s1868_s5 }
 0x181   : > { %v570_v46 = vpop.permute.xlu0 %569 }
 0x182   : > { %v572_v47 = vmul.f32 %v1765_v43, %v570_v46 }
 0x1f2   : > { %v580_v48 = vpop.permute.xlu1 %579 }
 0x1f3   : > { %v582_v49 = vadd.f32 %v580_v48, %v572_v47 }
 0x1f5   : > { %1766 = vtanh.f32 %v582_v49 }
 0x202   : > { %v1767_v50 = vpop.eup %1766 }
 0x203   : > { %585 = vrot.lane.b32.xlu1 %v1767_v50, %s1867_s30 }
 0x275   : > { %v586_v51 = vpop.permute.xlu1 %585 }
 0x276   : > { %v588_v52 = vmul.f32 %v1765_v43, %v586_v51 }
 0x278   : > { %590 = vrot.lane.b32.xlu0 %v588_v52, %s1868_s5 }
 0x2ea   : > { %v591_v53 = vpop.permute.xlu0 %590 }
 0x2eb   : > { %594 = vst.msk [vmem:[%s593_s6] sm:$0xff] %vm486_vm3, %v591_v53  ;;  %1646 = vmatmul.mubr.msk.f32.vlgmr.msra.gmra.mxu1 %vm486_vm3, %v591_v53  ;;  %s1547_s6 = sshll.u32 %s2144_s29, 3 }
 0x2ec   : > { %1660 = vmatpush3.msra.mxu1 %v1969_v7  ;;  %1667 = vmatprep.mubr.msk.f32.mxu1 %vm1866_vm2, %v1865_v5  ;;  %s1025_s7 = scalar_lea.vmem [#allocation2], %s1547_s6  ;;  %s1128_s8 = scalar_lea.vmem %s1960_s1, %s1547_s6 }
 0x2ed   : > { %1661 = vmatprep.subr.mxu1 %v1865_v5 }
 0x2ee   : > { %1662 = vmatpush3.msra.mxu1 %v1972_v8 }
 0x2ef   : > { %1663 = vmatprep.subr.mxu1 %v1865_v5 }
 0x2f0   : > { %1664 = vmatpush3.msra.mxu1 %v1980_v9 }
 0x2f1   : > { %1665 = vmatprep.subr.mxu1 %v1865_v5 }
 0x2f2   : > { %1666 = vmatpush3.msra.mxu1 %v1988_v12 }
 0x2f3   : > { %1681 = vmatprep.subr.mxu1 %v1865_v5 }
 0x3ab   : > { %v667_v55 = vpop.f32.mrf.mxu1 }
 0x3ac   : > { %v671_v56 = vadd.f32 %v667_v55, %v598_v54 }
 0x3ad   : > { %v1647_v57 = vpop.f32.mrf.mxu1 }
 0x3ae   : > { %1768 = vtanh.f32 %v671_v56  ;;  %v1537_v59 = vmul.f32 -1.442695, %v671_v56 }
 0x3b0   : > { %1770 = vpow2.f32 %v1537_v59 }
 0x3bb   : > { %v1769_v58 = vpop.eup %1768 }
 0x3bc   : > { %681 = vrot.lane.b32.xlu1 %v1769_v58, %s1867_s30 }
 0x3bd   : > { %v1771_v60 = vpop.eup %1770 }
 0x3be   : > { %v675_v61 = vadd.f32 1.0, %v1771_v60 }
 0x3c0   : > { %1772 = vrcp.f32 %v675_v61 }
 0x3cd   : > { %v1773_v62 = vpop.eup %1772 }
 0x3ce   : > { %v679_v1 = vmul.f32 %v1773_v62, %v582_v49  ;;  %v919_v49 = vld [vmem:[%s918_s24] sm:$0xff] }
 0x42e   : > { %v682_v63 = vpop.permute.xlu1 %681 }
 0x42f   : > { %v684_v0 = vmul.f32 %v1773_v62, %v682_v63 }
 0x431   : > { %686 = vrot.lane.b32.xlu0 %v684_v0, %s1868_s5 }
 0x4a3   : > { %v687_v2 = vpop.permute.xlu0 %686 }
 0x4a4   : > { %v689_v3 = vadd.f32 %v687_v2, %v679_v1 }
 0x4a6   : > { %1774 = vtanh.f32 %v689_v3 }
 0x4b3   : > { %v1775_v4 = vpop.eup %1774 }
 0x4b4   : > { %692 = vrot.lane.b32.xlu1 %v1775_v4, %s1867_s30 }
 0x526   : > { %v693_v6 = vpop.permute.xlu1 %692 }
 0x527   : > { %v695_v10 = vmul.f32 %v1773_v62, %v693_v6 }
 0x529   : > { %697 = vrot.lane.b32.xlu0 %v695_v10, %s1868_s5 }
 0x59b   : > { %v698_v11 = vpop.permute.xlu0 %697 }
 0x59c   : > { %701 = vst.msk [vmem:[%s700_s10] sm:$0xff] %vm486_vm3, %v698_v11  ;;  %1657 = vmatmul.mubr.msk.f32.vlgmr.msra.gmra.mxu0 %vm486_vm3, %v698_v11  ;;  %s1550_s10 = sshll.u32 %s2156_s9, 3 }
 0x59d   : > { %1671 = vmatpush3.msra.mxu0 %v1969_v7  ;;  %1678 = vmatprep.mubr.msk.f32.mxu0 %vm1866_vm2, %v1865_v5  ;;  %s1132_s11 = scalar_lea.vmem [#allocation2], %s1550_s10  ;;  %s1235_s12 = scalar_lea.vmem %s1960_s1, %s1550_s10 }
 0x59e   : > { %1672 = vmatprep.subr.mxu0 %v1865_v5 }
 0x59f   : > { %1673 = vmatpush3.msra.mxu0 %v1972_v8 }
 0x5a0   : > { %1674 = vmatprep.subr.mxu0 %v1865_v5 }
 0x5a1   : > { %1675 = vmatpush3.msra.mxu0 %v1980_v9 }
 0x5a2   : > { %1676 = vmatprep.subr.mxu0 %v1865_v5 }
 0x5a3   : > { %1677 = vmatpush3.msra.mxu0 %v1988_v12 }
 0x5a4   : > { %1692 = vmatprep.subr.mxu0 %v1865_v5 }
 0x65c   : > { %v774_v14 = vpop.f32.mrf.mxu0 }
 0x65d   : > { %v778_v15 = vadd.f32 %v774_v14, %v705_v13 }
 0x65e   : > { %v1658_v16 = vpop.f32.mrf.mxu0 }
 0x65f   : > { %1776 = vtanh.f32 %v778_v15  ;;  %v1540_v18 = vmul.f32 -1.442695, %v778_v15 }
 0x661   : > { %1778 = vpow2.f32 %v1540_v18 }
 0x66c   : > { %v1777_v17 = vpop.eup %1776 }
 0x66d   : > { %788 = vrot.lane.b32.xlu1 %v1777_v17, %s1867_s30 }
 0x66e   : > { %v1779_v19 = vpop.eup %1778 }
 0x66f   : > { %v782_v20 = vadd.f32 1.0, %v1779_v19 }
 0x671   : > { %1780 = vrcp.f32 %v782_v20 }
 0x67e   : > { %v1781_v21 = vpop.eup %1780 }
 0x67f   : > { %v786_v24 = vmul.f32 %v1781_v21, %v689_v3 }
 0x6df   : > { %v789_v22 = vpop.permute.xlu1 %788 }
 0x6e0   : > { %v791_v23 = vmul.f32 %v1781_v21, %v789_v22 }
 0x6e2   : > { %793 = vrot.lane.b32.xlu0 %v791_v23, %s1868_s5 }
 0x754   : > { %v794_v25 = vpop.permute.xlu0 %793 }
 0x755   : > { %v796_v26 = vadd.f32 %v794_v25, %v786_v24 }
 0x757   : > { %1782 = vtanh.f32 %v796_v26 }
 0x764   : > { %v1783_v27 = vpop.eup %1782 }
 0x765   : > { %799 = vrot.lane.b32.xlu1 %v1783_v27, %s1867_s30 }
 0x7d7   : > { %v800_v28 = vpop.permute.xlu1 %799 }
 0x7d8   : > { %v802_v29 = vmul.f32 %v1781_v21, %v800_v28  ;;  %v1133_v21 = vld [vmem:[%s1132_s11] sm:$0xff] }
 0x7da   : > { %804 = vrot.lane.b32.xlu0 %v802_v29, %s1868_s5 }
 0x84c   : > { %v805_v30 = vpop.permute.xlu0 %804 }
 0x84d   : > { %808 = vst.msk [vmem:[%s807_s14] sm:$0xff] %vm486_vm3, %v805_v30  ;;  %1668 = vmatmul.mubr.msk.f32.vlgmr.msra.gmra.mxu1 %vm486_vm3, %v805_v30  ;;  %s1553_s14 = sshll.u32 %s2168_s13, 3 }
 0x84e   : > { %1682 = vmatpush3.msra.mxu1 %v1969_v7  ;;  %1689 = vmatprep.mubr.msk.f32.mxu1 %vm1866_vm2, %v1865_v5  ;;  %s1239_s22 = scalar_lea.vmem [#allocation2], %s1553_s14  ;;  %s1342_s23 = scalar_lea.vmem %s1960_s1, %s1553_s14 }
 0x84f   : > { %1683 = vmatprep.subr.mxu1 %v1865_v5 }
 0x850   : > { %1684 = vmatpush3.msra.mxu1 %v1972_v8 }
 0x851   : > { %1685 = vmatprep.subr.mxu1 %v1865_v5 }
 0x852   : > { %1686 = vmatpush3.msra.mxu1 %v1980_v9 }
 0x853   : > { %1687 = vmatprep.subr.mxu1 %v1865_v5 }
 0x854   : > { %1688 = vmatpush3.msra.mxu1 %v1988_v12 }
 0x855   : > { %1703 = vmatprep.subr.mxu1 %v1865_v5 }
 0x90d   : > { %v881_v32 = vpop.f32.mrf.mxu1 }
 0x90e   : > { %v885_v33 = vadd.f32 %v881_v32, %v812_v31 }
 0x90f   : > { %v1669_v34 = vpop.f32.mrf.mxu1 }
 0x910   : > { %1784 = vtanh.f32 %v885_v33  ;;  %v1543_v36 = vmul.f32 -1.442695, %v885_v33 }
 0x912   : > { %1786 = vpow2.f32 %v1543_v36 }
 0x91d   : > { %v1785_v35 = vpop.eup %1784 }
 0x91e   : > { %895 = vrot.lane.b32.xlu1 %v1785_v35, %s1867_s30 }
 0x91f   : > { %v1787_v37 = vpop.eup %1786 }
 0x920   : > { %v889_v38 = vadd.f32 1.0, %v1787_v37 }
 0x922   : > { %1788 = vrcp.f32 %v889_v38 }
 0x92f   : > { %v1789_v39 = vpop.eup %1788 }
 0x930   : > { %v893_v42 = vmul.f32 %v1789_v39, %v796_v26 }
 0x990   : > { %v896_v40 = vpop.permute.xlu1 %895 }
 0x991   : > { %v898_v41 = vmul.f32 %v1789_v39, %v896_v40 }
 0x993   : > { %900 = vrot.lane.b32.xlu0 %v898_v41, %s1868_s5 }
 0xa05   : > { %v901_v43 = vpop.permute.xlu0 %900 }
 0xa06   : > { %v903_v44 = vadd.f32 %v901_v43, %v893_v42 }
 0xa08   : > { %1790 = vtanh.f32 %v903_v44 }
 0xa15   : > { %v1791_v45 = vpop.eup %1790 }
 0xa16   : > { %906 = vrot.lane.b32.xlu1 %v1791_v45, %s1867_s30 }
 0xa88   : > { %v907_v46 = vpop.permute.xlu1 %906 }
 0xa89   : > { %v909_v47 = vmul.f32 %v1789_v39, %v907_v46  ;;  %v1240_v39 = vld [vmem:[%s1239_s22] sm:$0xff] }
 0xa8b   : > { %911 = vrot.lane.b32.xlu0 %v909_v47, %s1868_s5 }
 0xafd   : > { %v912_v48 = vpop.permute.xlu0 %911 }
 0xafe   : > { %915 = vst.msk [vmem:[%s914_s28] sm:$0xff] %vm486_vm3, %v912_v48  ;;  %1679 = vmatmul.mubr.msk.f32.vlgmr.msra.gmra.mxu0 %vm486_vm3, %v912_v48 }
 0xaff   : > { %1693 = vmatpush3.msra.mxu0 %v1969_v7  ;;  %1700 = vmatprep.mubr.msk.f32.mxu0 %vm1866_vm2, %v1865_v5 }
 0xb00   : > { %1694 = vmatprep.subr.mxu0 %v1865_v5 }
 0xb01   : > { %1695 = vmatpush3.msra.mxu0 %v1972_v8 }
 0xb02   : > { %1696 = vmatprep.subr.mxu0 %v1865_v5 }
 0xb03   : > { %1697 = vmatpush3.msra.mxu0 %v1980_v9 }
 0xb04   : > { %1698 = vmatprep.subr.mxu0 %v1865_v5 }
 0xb05   : > { %1699 = vmatpush3.msra.mxu0 %v1988_v12 }
 0xbbe   : > { %v988_v50 = vpop.f32.mrf.mxu0 }
 0xbbf   : > { %v992_v51 = vadd.f32 %v988_v50, %v919_v49 }
 0xbc0   : > { %v1680_v52 = vpop.f32.mrf.mxu0 }
 0xbc1   : > { %1792 = vtanh.f32 %v992_v51  ;;  %v1546_v54 = vmul.f32 -1.442695, %v992_v51 }
 0xbc3   : > { %1794 = vpow2.f32 %v1546_v54 }
 0xbce   : > { %v1793_v53 = vpop.eup %1792 }
 0xbcf   : > { %1002 = vrot.lane.b32.xlu1 %v1793_v53, %s1867_s30 }
 0xbd0   : > { %v1795_v55 = vpop.eup %1794 }
 0xbd1   : > { %v996_v56 = vadd.f32 1.0, %v1795_v55 }
 0xbd3   : > { %1796 = vrcp.f32 %v996_v56 }
 0xbe0   : > { %v1797_v57 = vpop.eup %1796 }
 0xbe1   : > { %v1000_v60 = vmul.f32 %v1797_v57, %v903_v44 }
 0xc41   : > { %v1003_v58 = vpop.permute.xlu1 %1002 }
 0xc42   : > { %v1005_v59 = vmul.f32 %v1797_v57, %v1003_v58 }
 0xc44   : > { %1007 = vrot.lane.b32.xlu0 %v1005_v59, %s1868_s5 }
 0xcb6   : > { %v1008_v61 = vpop.permute.xlu0 %1007 }
 0xcb7   : > { %v1010_v62 = vadd.f32 %v1008_v61, %v1000_v60 }
 0xcb9   : > { %1798 = vtanh.f32 %v1010_v62 }
 0xcc6   : > { %v1799_v63 = vpop.eup %1798 }
 0xcc7   : > { %1013 = vrot.lane.b32.xlu1 %v1799_v63, %s1867_s30 }
 0xd39   : > { %v1014_v0 = vpop.permute.xlu1 %1013 }
 0xd3a   : > { %v1016_v1 = vmul.f32 %v1797_v57, %v1014_v0 }
 0xd3c   : > { %1018 = vrot.lane.b32.xlu0 %v1016_v1, %s1868_s5 }
 0xdae   : > { %v1019_v2 = vpop.permute.xlu0 %1018 }
 0xdaf   : > { %1022 = vst.msk [vmem:[%s1021_s26] sm:$0xff] %vm486_vm3, %v1019_v2  ;;  %1690 = vmatmul.mubr.msk.f32.vlgmr.msra.gmra.mxu1 %vm486_vm3, %v1019_v2 }
 0xdb0   : > { %1704 = vmatpush3.msra.mxu1 %v1969_v7  ;;  %1711 = vmatprep.mubr.msk.f32.mxu1 %vm1866_vm2, %v1865_v5  ;;  %v1026_v7 = vld [vmem:[%s1025_s7] sm:$0xff] }
 0xdb1   : > { %1705 = vmatprep.subr.mxu1 %v1865_v5 }
 0xdb2   : > { %1706 = vmatpush3.msra.mxu1 %v1972_v8 }
 0xdb3   : > { %1707 = vmatprep.subr.mxu1 %v1865_v5 }
 0xdb4   : > { %1708 = vmatpush3.msra.mxu1 %v1980_v9 }
 0xdb5   : > { %1709 = vmatprep.subr.mxu1 %v1865_v5 }
 0xdb6   : > { %1710 = vmatpush3.msra.mxu1 %v1988_v12 }
 0xe6f   : > { %v1095_v3 = vpop.f32.mrf.mxu1 }
 0xe70   : > { %v1099_v4 = vadd.f32 %v1095_v3, %v1026_v7 }
 0xe71   : > { %v1691_v6 = vpop.f32.mrf.mxu1 }
 0xe72   : > { %1800 = vtanh.f32 %v1099_v4  ;;  %v1549_v10 = vmul.f32 -1.442695, %v1099_v4 }
 0xe74   : > { %1802 = vpow2.f32 %v1549_v10 }
 0xe7f   : > { %v1801_v8 = vpop.eup %1800 }
 0xe80   : > { %1109 = vrot.lane.b32.xlu1 %v1801_v8, %s1867_s30 }
 0xe81   : > { %v1803_v9 = vpop.eup %1802 }
 0xe82   : > { %v1103_v5 = vadd.f32 1.0, %v1803_v9 }
 0xe84   : > { %1804 = vrcp.f32 %v1103_v5 }
 0xe91   : > { %v1805_v12 = vpop.eup %1804 }
 0xe92   : > { %v1107_v14 = vmul.f32 %v1805_v12, %v1010_v62 }
 0xef2   : > { %v1110_v11 = vpop.permute.xlu1 %1109 }
 0xef3   : > { %v1112_v13 = vmul.f32 %v1805_v12, %v1110_v11 }
 0xef5   : > { %1114 = vrot.lane.b32.xlu0 %v1112_v13, %s1868_s5 }
 0xf67   : > { %v1115_v15 = vpop.permute.xlu0 %1114 }
 0xf68   : > { %v1117_v16 = vadd.f32 %v1115_v15, %v1107_v14 }
 0xf6a   : > { %1806 = vtanh.f32 %v1117_v16 }
 0xf77   : > { %v1807_v17 = vpop.eup %1806 }
 0xf78   : > { %1120 = vrot.lane.b32.xlu1 %v1807_v17, %s1867_s30 }
 0xfea   : > { %v1121_v18 = vpop.permute.xlu1 %1120 }
 0xfeb   : > { %v1123_v19 = vmul.f32 %v1805_v12, %v1121_v18 }
 0xfed   : > { %1125 = vrot.lane.b32.xlu0 %v1123_v19, %s1868_s5 }
0x105f   : > { %v1126_v20 = vpop.permute.xlu0 %1125 }
0x1060   : > { %1129 = vst.msk [vmem:[%s1128_s8] sm:$0xff] %vm486_vm3, %v1126_v20  ;;  %1701 = vmatmul.mubr.msk.f32.vlgmr.msra.gmra.mxu0 %vm486_vm3, %v1126_v20 }
0x1120   : > { %v1202_v22 = vpop.f32.mrf.mxu0 }
0x1121   : > { %v1206_v23 = vadd.f32 %v1202_v22, %v1133_v21 }
0x1122   : > { %v1702_v24 = vpop.f32.mrf.mxu0 }
0x1123   : > { %1808 = vtanh.f32 %v1206_v23  ;;  %v1552_v26 = vmul.f32 -1.442695, %v1206_v23 }
0x1125   : > { %1810 = vpow2.f32 %v1552_v26 }
0x1130   : > { %v1809_v25 = vpop.eup %1808 }
0x1131   : > { %1216 = vrot.lane.b32.xlu1 %v1809_v25, %s1867_s30 }
0x1132   : > { %v1811_v27 = vpop.eup %1810 }
0x1133   : > { %v1210_v28 = vadd.f32 1.0, %v1811_v27 }
0x1135   : > { %1812 = vrcp.f32 %v1210_v28 }
0x1142   : > { %v1813_v29 = vpop.eup %1812 }
0x1143   : > { %v1214_v32 = vmul.f32 %v1813_v29, %v1117_v16 }
0x11a3   : > { %v1217_v30 = vpop.permute.xlu1 %1216 }
0x11a4   : > { %v1219_v31 = vmul.f32 %v1813_v29, %v1217_v30 }
0x11a6   : > { %1221 = vrot.lane.b32.xlu0 %v1219_v31, %s1868_s5 }
0x1218   : > { %v1222_v33 = vpop.permute.xlu0 %1221 }
0x1219   : > { %v1224_v34 = vadd.f32 %v1222_v33, %v1214_v32 }
0x121b   : > { %1814 = vtanh.f32 %v1224_v34 }
0x1228   : > { %v1815_v35 = vpop.eup %1814 }
0x1229   : > { %1227 = vrot.lane.b32.xlu1 %v1815_v35, %s1867_s30 }
0x129b   : > { %v1228_v36 = vpop.permute.xlu1 %1227 }
0x129c   : > { %v1230_v37 = vmul.f32 %v1813_v29, %v1228_v36 }
0x129e   : > { %1232 = vrot.lane.b32.xlu0 %v1230_v37, %s1868_s5 }
0x1310   : > { %v1233_v38 = vpop.permute.xlu0 %1232 }
0x1311   : > { %1236 = vst.msk [vmem:[%s1235_s12] sm:$0xff] %vm486_vm3, %v1233_v38  ;;  %1712 = vmatmul.mubr.msk.f32.vlgmr.msra.gmra.mxu1 %vm486_vm3, %v1233_v38 }
0x13d1   : > { %v1309_v40 = vpop.f32.mrf.mxu1 }
0x13d2   : > { %v1313_v41 = vadd.f32 %v1309_v40, %v1240_v39 }
0x13d3   : > { %v1713_v42 = vpop.f32.mrf.mxu1 }
0x13d4   : > { %1816 = vtanh.f32 %v1313_v41  ;;  %v1555_v44 = vmul.f32 -1.442695, %v1313_v41 }
0x13d6   : > { %1818 = vpow2.f32 %v1555_v44 }
0x13e1   : > { %v1817_v43 = vpop.eup %1816 }
0x13e2   : > { %1323 = vrot.lane.b32.xlu1 %v1817_v43, %s1867_s30 }
0x13e3   : > { %v1819_v45 = vpop.eup %1818 }
0x13e4   : > { %v1317_v46 = vadd.f32 1.0, %v1819_v45 }
0x13e6   : > { %1820 = vrcp.f32 %v1317_v46 }
0x13f3   : > { %v1821_v47 = vpop.eup %1820 }
0x13f4   : > { %v1321_v50 = vmul.f32 %v1821_v47, %v1224_v34 }
0x1454   : > { %v1324_v48 = vpop.permute.xlu1 %1323 }
0x1455   : > { %v1326_v49 = vmul.f32 %v1821_v47, %v1324_v48 }
0x1457   : > { %1328 = vrot.lane.b32.xlu0 %v1326_v49, %s1868_s5 }
0x14c9   : > { %v1329_v51 = vpop.permute.xlu0 %1328 }
0x14ca   : > { %v1331_v52 = vadd.f32 %v1329_v51, %v1321_v50 }
0x14cc   : > { %1822 = vtanh.f32 %v1331_v52 }
0x14d9   : > { %v1823_v53 = vpop.eup %1822 }
0x14da   : > { %1334 = vrot.lane.b32.xlu1 %v1823_v53, %s1867_s30 }
0x14de   : > { %1346 = vrot.lane.b32.xlu1 %v1331_v52, %s1869_s16 }
0x154c   : > { %v1335_v54 = vpop.permute.xlu1 %1334 }
0x154d   : > { %v1337_v55 = vmul.f32 %v1821_v47, %v1335_v54 }
0x154f   : > { %1339 = vrot.lane.b32.xlu0 %v1337_v55, %s1868_s5 }
0x1550   : > { %v1347_v56 = vpop.permute.xlu1 %1346 }
0x1551   : > { %1349 = vst.msk [vmem:[#allocation4] sm:$0xff] %vm486_vm3, %v1347_v56 }
0x15c1   : > { %v1340_v57 = vpop.permute.xlu0 %1339 }
0x15c2   : > { %1343 = vst.msk [vmem:[%s1342_s23] sm:$0xff] %vm486_vm3, %v1340_v57  ;;  %1344 = vst.msk [vmem:[#allocation3] sm:$0xff] %vm486_vm3, %v1340_v57 }
0x15c3 PF: > { %s14_s19 = sadd.s32 1, %s1862_s19   ;;  %s2205_s15 = smov %s1854_s17 }
0x15c4   : > { %p11_p9 = scmp.ge.s32.totalorder %s14_s19, 6   ;;  %s2206_s16 = smov %s1858_s18 }
0x15c5   : > { %s2207_s17 = smov %s2210_s20  ;;  %s2208_s18 = smov %s2214_s21 }
0x15c6   :  { %13 = sbr.rel (!%p11_p9) target bundleno = 3 (0x3), region = 95 }

</bundles_post_ra>
